<compile_context>
chip_gen: v7x
topology: tpu7x:2x2x1
jax: 0.10.0
libtpu: 0.0.40
codegen_flags: <defaults>
</compile_context>

<pallas_src>
import functools

import jax
import jax.numpy as jnp
from jax import lax
from jax.experimental import pallas as pl
from jax.experimental.pallas import tpu as pltpu


def _round_up(x, m):
    return ((x + m - 1) // m) * m


def _lstm_kernel(x_ref, wih_ref, whh_ref, b_ref, wout_ref, bout_ref,
                 h0_ref, c0_ref,
                 logits_ref, hn_ref, cn_ref,
                 gx_sc, h_all_sc, *, seq_len, batch, hidden_dim):
    H = hidden_dim
    Bp = batch

    # ---- Hoisted input projection: one MXU call for ALL timesteps ----------
    # gx_sc[t*Bp + b, :] = x_t[b] @ W_ih^T + (b_ih + b_hh)
    gx_sc[...] = (jnp.dot(x_ref[...], wih_ref[...],
                          preferred_element_type=jnp.float32)
                  + b_ref[...])

    whh = whh_ref[...]                                    # (H, 4H)

    # Lane mask selecting the tanh (g) gate block inside the full 4H vreg;
    # hoisted out of the loop (constant).
    lane = lax.broadcasted_iota(jnp.int32, (Bp, 4 * H), 1)
    is_g = (lane >= 2 * H) & (lane < 3 * H)

    # ---- Recurrence: only h @ W_hh^T + cell update on the serial path ------
    def step(t, carry):
        h, c = carry
        start = pl.multiple_of(t * Bp, Bp)                # Bp-aligned sublanes
        gates = gx_sc[pl.ds(start, Bp), :] + jnp.dot(
            h, whh, preferred_element_type=jnp.float32)   # (Bp, 4H)
        # Whole-vreg activations (EUP), one lane-select, then static slices.
        act = jnp.where(is_g, jnp.tanh(gates), jax.nn.sigmoid(gates))
        i_g = act[:, 0 * H:1 * H]
        f_g = act[:, 1 * H:2 * H]
        g_g = act[:, 2 * H:3 * H]
        o_g = act[:, 3 * H:4 * H]
        c_new = f_g * c + i_g * g_g
        h_new = o_g * jnp.tanh(c_new)
        h_all_sc[pl.ds(start, Bp), :] = h_new             # stash for final proj
        return h_new, c_new

    h_fin, c_fin = lax.fori_loop(0, seq_len, step,
                                 (h0_ref[...], c0_ref[...]), unroll=True)

    hn_ref[...] = h_fin
    cn_ref[...] = c_fin

    # ---- Deferred vocab projection: one matmul + one lane-dense store ------
    logits_ref[...] = (jnp.dot(h_all_sc[...], wout_ref[...],
                               preferred_element_type=jnp.float32)
                       + bout_ref[...]).astype(logits_ref.dtype)


def my_lstm_forward(tokens, hidden, params):
    """tokens: (B, T) int32; hidden: (h0, c0) each (1, B, H)."""
    h0_all, c0_all = hidden
    B, T = tokens.shape
    E = params["embedding"].shape[1]
    H = params["w_hh"].shape[1]          # w_hh: (4H, H)
    V = params["w_out"].shape[0]         # w_out: (V, H)

    Bp = _round_up(max(B, 8), 8)         # pad batch to a full sublane group
    Vp = _round_up(max(V, 128), 128)     # pad vocab so logits store is lane-dense

    # Embedding lookup (gather) is glue, done in plain JAX.
    emb = jnp.take(params["embedding"], tokens, axis=0)      # (B, T, E)
    x_tbe = jnp.transpose(emb, (1, 0, 2))                    # (T, B, E) time-major
    x_tbe = jnp.pad(x_tbe, ((0, 0), (0, Bp - B), (0, 0)))    # (T, Bp, E)
    x2d = x_tbe.reshape(T * Bp, E)                           # rows ordered (t, b)

    wih_t = params["w_ih"].T                                 # (E, 4H)
    whh_t = params["w_hh"].T                                 # (H, 4H)
    bias = (params["b_ih"] + params["b_hh"]).reshape(1, 4 * H)
    wout_t = jnp.pad(params["w_out"].T, ((0, 0), (0, Vp - V)))   # (H, Vp)
    bout = jnp.pad(params["b_out"], (0, Vp - V)).reshape(1, Vp)  # (1, Vp)

    h0 = jnp.pad(h0_all[0], ((0, Bp - B), (0, 0)))           # (Bp, H)
    c0 = jnp.pad(c0_all[0], ((0, Bp - B), (0, 0)))           # (Bp, H)

    kernel = functools.partial(_lstm_kernel, seq_len=T, batch=Bp, hidden_dim=H)

    vmem = pl.BlockSpec(memory_space=pltpu.MemorySpace.VMEM)
    logits_pad, h_n, c_n = pl.pallas_call(
        kernel,
        out_shape=(
            jax.ShapeDtypeStruct((T * Bp, Vp), jnp.float32),
            jax.ShapeDtypeStruct((Bp, H), jnp.float32),
            jax.ShapeDtypeStruct((Bp, H), jnp.float32),
        ),
        in_specs=[vmem] * 8,
        out_specs=(vmem, vmem, vmem),
        scratch_shapes=[
            pltpu.VMEM((T * Bp, 4 * H), jnp.float32),   # hoisted input-proj gates
            pltpu.VMEM((T * Bp, H), jnp.float32),       # h_t for all timesteps
        ],
    )(x2d, wih_t, whh_t, bias, wout_t, bout, h0, c0)

    # kernel rows are (t, b); PyTorch's .view(B*T, H) rows are (b, t).
    logits_tbv = logits_pad.reshape(T, Bp, Vp)[:, :B, :V]    # (T, B, V)
    out = jnp.transpose(logits_tbv, (1, 0, 2)).reshape(B * T, V)
    return out, (h_n[:B][None, ...], c_n[:B][None, ...])


def _reference_forward(tokens, hidden, params):
    """Pure-JAX reference (same semantics as the PyTorch module)."""
    h0_all, c0_all = hidden
    B, T = tokens.shape
    H = params["w_hh"].shape[1]
    emb = jnp.take(params["embedding"], tokens, axis=0)       # (B, T, E)
    wih_t = params["w_ih"].T
    whh_t = params["w_hh"].T
    bias = params["b_ih"] + params["b_hh"]

    def step(carry, x_t):
        h, c = carry
        gates = x_t @ wih_t + h @ whh_t + bias
        i_g = jax.nn.sigmoid(gates[:, 0 * H:1 * H])
        f_g = jax.nn.sigmoid(gates[:, 1 * H:2 * H])
        g_g = jnp.tanh(gates[:, 2 * H:3 * H])
        o_g = jax.nn.sigmoid(gates[:, 3 * H:4 * H])
        c_new = f_g * c + i_g * g_g
        h_new = o_g * jnp.tanh(c_new)
        return (h_new, c_new), h_new

    (h_n, c_n), hs = jax.lax.scan(step, (h0_all[0], c0_all[0]),
                                  jnp.transpose(emb, (1, 0, 2)))
    outs = jnp.transpose(hs, (1, 0, 2)).reshape(B * T, H)
    logits = outs @ params["w_out"].T + params["b_out"]
    return logits, (h_n[None, ...], c_n[None, ...])


def init_params(key, vocab, embed_dim, hidden_dim):
    ks = jax.random.split(key, 7)
    scale = 0.1
    return {
        "embedding": scale * jax.random.normal(ks[0], (vocab, embed_dim), jnp.float32),
        "w_ih": scale * jax.random.normal(ks[1], (4 * hidden_dim, embed_dim), jnp.float32),
        "w_hh": scale * jax.random.normal(ks[2], (4 * hidden_dim, hidden_dim), jnp.float32),
        "b_ih": scale * jax.random.normal(ks[3], (4 * hidden_dim,), jnp.float32),
        "b_hh": scale * jax.random.normal(ks[4], (4 * hidden_dim,), jnp.float32),
        "w_out": scale * jax.random.normal(ks[5], (vocab, hidden_dim), jnp.float32),
        "b_out": scale * jax.random.normal(ks[6], (vocab,), jnp.float32),
    }


if __name__ == "__main__":
    # small shapes consistent with the module: vocab=16, embed=20, hidden=32, B=2, T=8
    VOCAB, EMBED, HIDDEN, B, T = 16, 20, 32, 2, 8

    key = jax.random.PRNGKey(0)
    pkey, tkey = jax.random.split(key)
    params = init_params(pkey, VOCAB, EMBED, HIDDEN)

    tokens = jax.random.randint(tkey, (B, T), 0, VOCAB, dtype=jnp.int32)
    # init_hidden: zeros of shape (layers*direction, B, H)
    hidden = (jnp.zeros((1, B, HIDDEN), jnp.float32),
              jnp.zeros((1, B, HIDDEN), jnp.float32))

    # NOTE: nn.LSTM dropout is inactive with num_layers=1, so it is not modeled.
    out, (h_n, c_n) = my_lstm_forward(tokens, hidden, params)
    jax.block_until_ready((out, h_n, c_n))

    ref_out, (ref_h, ref_c) = _reference_forward(tokens, hidden, params)
    assert out.shape == (B * T, VOCAB)
    assert h_n.shape == (1, B, HIDDEN) and c_n.shape == (1, B, HIDDEN)
    assert jnp.allclose(out, ref_out, atol=1e-4, rtol=1e-4)
    assert jnp.allclose(h_n, ref_h, atol=1e-4, rtol=1e-4)
    assert jnp.allclose(c_n, ref_c, atol=1e-4, rtol=1e-4)

    print("KERNEL_OK")
</pallas_src>

<mosaic_0001>
module attributes {stable_mosaic.version = 11 : i64} {
  func.func @_lstm_kernel(%arg0: memref<64x20xf32, #tpu.memory_space<vmem>>, %arg1: memref<20x128xf32, #tpu.memory_space<vmem>>, %arg2: memref<32x128xf32, #tpu.memory_space<vmem>>, %arg3: memref<1x128xf32, #tpu.memory_space<vmem>>, %arg4: memref<32x128xf32, #tpu.memory_space<vmem>>, %arg5: memref<1x128xf32, #tpu.memory_space<vmem>>, %arg6: memref<8x32xf32, #tpu.memory_space<vmem>>, %arg7: memref<8x32xf32, #tpu.memory_space<vmem>>, %arg8: memref<64x128xf32, #tpu.memory_space<vmem>>, %arg9: memref<8x32xf32, #tpu.memory_space<vmem>>, %arg10: memref<8x32xf32, #tpu.memory_space<vmem>>, %arg11: memref<64x128xf32, #tpu.memory_space<vmem>>, %arg12: memref<64x32xf32, #tpu.memory_space<vmem>>) attributes {dimension_semantics = [], scalar_prefetch = 0 : i64, scratch_operands = 2 : i64, tpu.core_type = #tpu.core_type<tc>} {
    %c0 = arith.constant 0 : index
    %c0_0 = arith.constant 0 : index
    %0 = vector.load %arg0[%c0, %c0_0] : memref<64x20xf32, #tpu.memory_space<vmem>>, vector<64x20xf32>
    %c0_1 = arith.constant 0 : index
    %c0_2 = arith.constant 0 : index
    %1 = vector.load %arg1[%c0_1, %c0_2] : memref<20x128xf32, #tpu.memory_space<vmem>>, vector<20x128xf32>
    %cst = arith.constant dense<0.000000e+00> : vector<64x128xf32>
    %2 = tpu.matmul %0, %1, %cst {dimension_numbers = #tpu.dot_dimension_numbers<[1], [0], [0], [1], [0, 0, 1, 1], [], []>} : vector<64x20xf32>, vector<20x128xf32>, vector<64x128xf32> -> vector<64x128xf32>
    %c0_3 = arith.constant 0 : index
    %c0_4 = arith.constant 0 : index
    %3 = vector.load %arg3[%c0_3, %c0_4] : memref<1x128xf32, #tpu.memory_space<vmem>>, vector<1x128xf32>
    %4 = vector.broadcast %3 : vector<1x128xf32> to vector<64x128xf32>
    %5 = arith.addf %2, %4 : vector<64x128xf32>
    %c0_5 = arith.constant 0 : index
    %c0_6 = arith.constant 0 : index
    %6 = vector.load %arg11[%c0_5, %c0_6] : memref<64x128xf32, #tpu.memory_space<vmem>>, vector<64x128xf32>
    tpu.vector_store %arg11[%c0_5, %c0_6], %5 {strides = array<i32>} : memref<64x128xf32, #tpu.memory_space<vmem>>, vector<64x128xf32>,
    %c0_7 = arith.constant 0 : index
    %c0_8 = arith.constant 0 : index
    %7 = vector.load %arg2[%c0_7, %c0_8] : memref<32x128xf32, #tpu.memory_space<vmem>>, vector<32x128xf32>
    %8 = tpu.iota {dimensions = array<i32: 1>} : vector<8x128xi32>
    %c64_i32 = arith.constant 64 : i32
    %9 = vector.broadcast %c64_i32 : i32 to vector<8x128xi32>
    %10 = arith.cmpi sge, %8, %9 : vector<8x128xi32>
    %c96_i32 = arith.constant 96 : i32
    %11 = vector.broadcast %c96_i32 : i32 to vector<8x128xi32>
    %12 = arith.cmpi slt, %8, %11 : vector<8x128xi32>
    %13 = arith.andi %10, %12 : vector<8x128xi1>
    %c0_9 = arith.constant 0 : index
    %c0_10 = arith.constant 0 : index
    %14 = vector.load %arg6[%c0_9, %c0_10] : memref<8x32xf32, #tpu.memory_space<vmem>>, vector<8x32xf32>
    %c0_11 = arith.constant 0 : index
    %c0_12 = arith.constant 0 : index
    %15 = vector.load %arg7[%c0_11, %c0_12] : memref<8x32xf32, #tpu.memory_space<vmem>>, vector<8x32xf32>
    %c0_i32 = arith.constant 0 : i32
    %c8_i32 = arith.constant 8 : i32
    %16 = arith.muli %c0_i32, %c8_i32 : i32
    %17 = tpu.assume_multiple %16, 8 : i32
    %18 = arith.index_cast %17 : i32 to index
    %c0_13 = arith.constant 0 : index
    %19 = vector.load %arg11[%18, %c0_13] : memref<64x128xf32, #tpu.memory_space<vmem>>, vector<8x128xf32>
    %cst_14 = arith.constant dense<0.000000e+00> : vector<8x128xf32>
    %20 = tpu.matmul %14, %7, %cst_14 {dimension_numbers = #tpu.dot_dimension_numbers<[1], [0], [0], [1], [0, 0, 1, 1], [], []>} : vector<8x32xf32>, vector<32x128xf32>, vector<8x128xf32> -> vector<8x128xf32>
    %21 = arith.addf %19, %20 : vector<8x128xf32>
    %22 = math.tanh %21 : vector<8x128xf32>
    %23 = arith.negf %21 : vector<8x128xf32>
    %24 = math.exp %23 : vector<8x128xf32>
    %cst_15 = arith.constant 1.000000e+00 : f32
    %25 = vector.broadcast %cst_15 : f32 to vector<8x128xf32>
    %26 = arith.addf %25, %24 : vector<8x128xf32>
    %27 = arith.divf %25, %26 : vector<8x128xf32>
    %28 = arith.select %13, %22, %27 : vector<8x128xi1>, vector<8x128xf32>
    %29 = vector.extract_strided_slice %28 {offsets = [0, 0], sizes = [8, 32], strides = [1, 1]} : vector<8x128xf32> to vector<8x32xf32>
    %30 = vector.extract_strided_slice %28 {offsets = [0, 32], sizes = [8, 32], strides = [1, 1]} : vector<8x128xf32> to vector<8x32xf32>
    %31 = vector.extract_strided_slice %28 {offsets = [0, 64], sizes = [8, 32], strides = [1, 1]} : vector<8x128xf32> to vector<8x32xf32>
    %32 = vector.extract_strided_slice %28 {offsets = [0, 96], sizes = [8, 32], strides = [1, 1]} : vector<8x128xf32> to vector<8x32xf32>
    %33 = arith.mulf %30, %15 : vector<8x32xf32>
    %34 = arith.mulf %29, %31 : vector<8x32xf32>
    %35 = arith.addf %33, %34 : vector<8x32xf32>
    %36 = math.tanh %35 : vector<8x32xf32>
    %37 = arith.mulf %32, %36 : vector<8x32xf32>
    %38 = arith.index_cast %17 : i32 to index
    %c0_16 = arith.constant 0 : index
    %39 = vector.load %arg12[%38, %c0_16] : memref<64x32xf32, #tpu.memory_space<vmem>>, vector<8x32xf32>
    tpu.vector_store %arg12[%38, %c0_16], %37 {strides = array<i32>} : memref<64x32xf32, #tpu.memory_space<vmem>>, vector<8x32xf32>,
    %c1_i32 = arith.constant 1 : i32
    %c8_i32_17 = arith.constant 8 : i32
    %40 = arith.muli %c1_i32, %c8_i32_17 : i32
    %41 = tpu.assume_multiple %40, 8 : i32
    %42 = arith.index_cast %41 : i32 to index
    %c0_18 = arith.constant 0 : index
    %43 = vector.load %arg11[%42, %c0_18] : memref<64x128xf32, #tpu.memory_space<vmem>>, vector<8x128xf32>
    %cst_19 = arith.constant dense<0.000000e+00> : vector<8x128xf32>
    %44 = tpu.matmul %37, %7, %cst_19 {dimension_numbers = #tpu.dot_dimension_numbers<[1], [0], [0], [1], [0, 0, 1, 1], [], []>} : vector<8x32xf32>, vector<32x128xf32>, vector<8x128xf32> -> vector<8x128xf32>
    %45 = arith.addf %43, %44 : vector<8x128xf32>
    %46 = math.tanh %45 : vector<8x128xf32>
    %47 = arith.negf %45 : vector<8x128xf32>
    %48 = math.exp %47 : vector<8x128xf32>
    %cst_20 = arith.constant 1.000000e+00 : f32
    %49 = vector.broadcast %cst_20 : f32 to vector<8x128xf32>
    %50 = arith.addf %49, %48 : vector<8x128xf32>
    %51 = arith.divf %49, %50 : vector<8x128xf32>
    %52 = arith.select %13, %46, %51 : vector<8x128xi1>, vector<8x128xf32>
    %53 = vector.extract_strided_slice %52 {offsets = [0, 0], sizes = [8, 32], strides = [1, 1]} : vector<8x128xf32> to vector<8x32xf32>
    %54 = vector.extract_strided_slice %52 {offsets = [0, 32], sizes = [8, 32], strides = [1, 1]} : vector<8x128xf32> to vector<8x32xf32>
    %55 = vector.extract_strided_slice %52 {offsets = [0, 64], sizes = [8, 32], strides = [1, 1]} : vector<8x128xf32> to vector<8x32xf32>
    %56 = vector.extract_strided_slice %52 {offsets = [0, 96], sizes = [8, 32], strides = [1, 1]} : vector<8x128xf32> to vector<8x32xf32>
    %57 = arith.mulf %54, %35 : vector<8x32xf32>
    %58 = arith.mulf %53, %55 : vector<8x32xf32>
    %59 = arith.addf %57, %58 : vector<8x32xf32>
    %60 = math.tanh %59 : vector<8x32xf32>
    %61 = arith.mulf %56, %60 : vector<8x32xf32>
    %62 = arith.index_cast %41 : i32 to index
    %c0_21 = arith.constant 0 : index
    %63 = vector.load %arg12[%62, %c0_21] : memref<64x32xf32, #tpu.memory_space<vmem>>, vector<8x32xf32>
    tpu.vector_store %arg12[%62, %c0_21], %61 {strides = array<i32>} : memref<64x32xf32, #tpu.memory_space<vmem>>, vector<8x32xf32>,
    %c2_i32 = arith.constant 2 : i32
    %c8_i32_22 = arith.constant 8 : i32
    %64 = arith.muli %c2_i32, %c8_i32_22 : i32
    %65 = tpu.assume_multiple %64, 8 : i32
    %66 = arith.index_cast %65 : i32 to index
    %c0_23 = arith.constant 0 : index
    %67 = vector.load %arg11[%66, %c0_23] : memref<64x128xf32, #tpu.memory_space<vmem>>, vector<8x128xf32>
    %cst_24 = arith.constant dense<0.000000e+00> : vector<8x128xf32>
    %68 = tpu.matmul %61, %7, %cst_24 {dimension_numbers = #tpu.dot_dimension_numbers<[1], [0], [0], [1], [0, 0, 1, 1], [], []>} : vector<8x32xf32>, vector<32x128xf32>, vector<8x128xf32> -> vector<8x128xf32>
    %69 = arith.addf %67, %68 : vector<8x128xf32>
    %70 = math.tanh %69 : vector<8x128xf32>
    %71 = arith.negf %69 : vector<8x128xf32>
    %72 = math.exp %71 : vector<8x128xf32>
    %cst_25 = arith.constant 1.000000e+00 : f32
    %73 = vector.broadcast %cst_25 : f32 to vector<8x128xf32>
    %74 = arith.addf %73, %72 : vector<8x128xf32>
    %75 = arith.divf %73, %74 : vector<8x128xf32>
    %76 = arith.select %13, %70, %75 : vector<8x128xi1>, vector<8x128xf32>
    %77 = vector.extract_strided_slice %76 {offsets = [0, 0], sizes = [8, 32], strides = [1, 1]} : vector<8x128xf32> to vector<8x32xf32>
    %78 = vector.extract_strided_slice %76 {offsets = [0, 32], sizes = [8, 32], strides = [1, 1]} : vector<8x128xf32> to vector<8x32xf32>
    %79 = vector.extract_strided_slice %76 {offsets = [0, 64], sizes = [8, 32], strides = [1, 1]} : vector<8x128xf32> to vector<8x32xf32>
    %80 = vector.extract_strided_slice %76 {offsets = [0, 96], sizes = [8, 32], strides = [1, 1]} : vector<8x128xf32> to vector<8x32xf32>
    %81 = arith.mulf %78, %59 : vector<8x32xf32>
    %82 = arith.mulf %77, %79 : vector<8x32xf32>
    %83 = arith.addf %81, %82 : vector<8x32xf32>
    %84 = math.tanh %83 : vector<8x32xf32>
    %85 = arith.mulf %80, %84 : vector<8x32xf32>
    %86 = arith.index_cast %65 : i32 to index
    %c0_26 = arith.constant 0 : index
    %87 = vector.load %arg12[%86, %c0_26] : memref<64x32xf32, #tpu.memory_space<vmem>>, vector<8x32xf32>
    tpu.vector_store %arg12[%86, %c0_26], %85 {strides = array<i32>} : memref<64x32xf32, #tpu.memory_space<vmem>>, vector<8x32xf32>,
    %c3_i32 = arith.constant 3 : i32
    %c8_i32_27 = arith.constant 8 : i32
    %88 = arith.muli %c3_i32, %c8_i32_27 : i32
    %89 = tpu.assume_multiple %88, 8 : i32
    %90 = arith.index_cast %89 : i32 to index
    %c0_28 = arith.constant 0 : index
    %91 = vector.load %arg11[%90, %c0_28] : memref<64x128xf32, #tpu.memory_space<vmem>>, vector<8x128xf32>
    %cst_29 = arith.constant dense<0.000000e+00> : vector<8x128xf32>
    %92 = tpu.matmul %85, %7, %cst_29 {dimension_numbers = #tpu.dot_dimension_numbers<[1], [0], [0], [1], [0, 0, 1, 1], [], []>} : vector<8x32xf32>, vector<32x128xf32>, vector<8x128xf32> -> vector<8x128xf32>
    %93 = arith.addf %91, %92 : vector<8x128xf32>
    %94 = math.tanh %93 : vector<8x128xf32>
    %95 = arith.negf %93 : vector<8x128xf32>
    %96 = math.exp %95 : vector<8x128xf32>
    %cst_30 = arith.constant 1.000000e+00 : f32
    %97 = vector.broadcast %cst_30 : f32 to vector<8x128xf32>
    %98 = arith.addf %97, %96 : vector<8x128xf32>
    %99 = arith.divf %97, %98 : vector<8x128xf32>
    %100 = arith.select %13, %94, %99 : vector<8x128xi1>, vector<8x128xf32>
    %101 = vector.extract_strided_slice %100 {offsets = [0, 0], sizes = [8, 32], strides = [1, 1]} : vector<8x128xf32> to vector<8x32xf32>
    %102 = vector.extract_strided_slice %100 {offsets = [0, 32], sizes = [8, 32], strides = [1, 1]} : vector<8x128xf32> to vector<8x32xf32>
    %103 = vector.extract_strided_slice %100 {offsets = [0, 64], sizes = [8, 32], strides = [1, 1]} : vector<8x128xf32> to vector<8x32xf32>
    %104 = vector.extract_strided_slice %100 {offsets = [0, 96], sizes = [8, 32], strides = [1, 1]} : vector<8x128xf32> to vector<8x32xf32>
    %105 = arith.mulf %102, %83 : vector<8x32xf32>
    %106 = arith.mulf %101, %103 : vector<8x32xf32>
    %107 = arith.addf %105, %106 : vector<8x32xf32>
    %108 = math.tanh %107 : vector<8x32xf32>
    %109 = arith.mulf %104, %108 : vector<8x32xf32>
    %110 = arith.index_cast %89 : i32 to index
    %c0_31 = arith.constant 0 : index
    %111 = vector.load %arg12[%110, %c0_31] : memref<64x32xf32, #tpu.memory_space<vmem>>, vector<8x32xf32>
    tpu.vector_store %arg12[%110, %c0_31], %109 {strides = array<i32>} : memref<64x32xf32, #tpu.memory_space<vmem>>, vector<8x32xf32>,
    %c4_i32 = arith.constant 4 : i32
    %c8_i32_32 = arith.constant 8 : i32
    %112 = arith.muli %c4_i32, %c8_i32_32 : i32
    %113 = tpu.assume_multiple %112, 8 : i32
    %114 = arith.index_cast %113 : i32 to index
    %c0_33 = arith.constant 0 : index
    %115 = vector.load %arg11[%114, %c0_33] : memref<64x128xf32, #tpu.memory_space<vmem>>, vector<8x128xf32>
    %cst_34 = arith.constant dense<0.000000e+00> : vector<8x128xf32>
    %116 = tpu.matmul %109, %7, %cst_34 {dimension_numbers = #tpu.dot_dimension_numbers<[1], [0], [0], [1], [0, 0, 1, 1], [], []>} : vector<8x32xf32>, vector<32x128xf32>, vector<8x128xf32> -> vector<8x128xf32>
    %117 = arith.addf %115, %116 : vector<8x128xf32>
    %118 = math.tanh %117 : vector<8x128xf32>
    %119 = arith.negf %117 : vector<8x128xf32>
    %120 = math.exp %119 : vector<8x128xf32>
    %cst_35 = arith.constant 1.000000e+00 : f32
    %121 = vector.broadcast %cst_35 : f32 to vector<8x128xf32>
    %122 = arith.addf %121, %120 : vector<8x128xf32>
    %123 = arith.divf %121, %122 : vector<8x128xf32>
    %124 = arith.select %13, %118, %123 : vector<8x128xi1>, vector<8x128xf32>
    %125 = vector.extract_strided_slice %124 {offsets = [0, 0], sizes = [8, 32], strides = [1, 1]} : vector<8x128xf32> to vector<8x32xf32>
    %126 = vector.extract_strided_slice %124 {offsets = [0, 32], sizes = [8, 32], strides = [1, 1]} : vector<8x128xf32> to vector<8x32xf32>
    %127 = vector.extract_strided_slice %124 {offsets = [0, 64], sizes = [8, 32], strides = [1, 1]} : vector<8x128xf32> to vector<8x32xf32>
    %128 = vector.extract_strided_slice %124 {offsets = [0, 96], sizes = [8, 32], strides = [1, 1]} : vector<8x128xf32> to vector<8x32xf32>
    %129 = arith.mulf %126, %107 : vector<8x32xf32>
    %130 = arith.mulf %125, %127 : vector<8x32xf32>
    %131 = arith.addf %129, %130 : vector<8x32xf32>
    %132 = math.tanh %131 : vector<8x32xf32>
    %133 = arith.mulf %128, %132 : vector<8x32xf32>
    %134 = arith.index_cast %113 : i32 to index
    %c0_36 = arith.constant 0 : index
    %135 = vector.load %arg12[%134, %c0_36] : memref<64x32xf32, #tpu.memory_space<vmem>>, vector<8x32xf32>
    tpu.vector_store %arg12[%134, %c0_36], %133 {strides = array<i32>} : memref<64x32xf32, #tpu.memory_space<vmem>>, vector<8x32xf32>,
    %c5_i32 = arith.constant 5 : i32
    %c8_i32_37 = arith.constant 8 : i32
    %136 = arith.muli %c5_i32, %c8_i32_37 : i32
    %137 = tpu.assume_multiple %136, 8 : i32
    %138 = arith.index_cast %137 : i32 to index
    %c0_38 = arith.constant 0 : index
    %139 = vector.load %arg11[%138, %c0_38] : memref<64x128xf32, #tpu.memory_space<vmem>>, vector<8x128xf32>
    %cst_39 = arith.constant dense<0.000000e+00> : vector<8x128xf32>
    %140 = tpu.matmul %133, %7, %cst_39 {dimension_numbers = #tpu.dot_dimension_numbers<[1], [0], [0], [1], [0, 0, 1, 1], [], []>} : vector<8x32xf32>, vector<32x128xf32>, vector<8x128xf32> -> vector<8x128xf32>
    %141 = arith.addf %139, %140 : vector<8x128xf32>
    %142 = math.tanh %141 : vector<8x128xf32>
    %143 = arith.negf %141 : vector<8x128xf32>
    %144 = math.exp %143 : vector<8x128xf32>
    %cst_40 = arith.constant 1.000000e+00 : f32
    %145 = vector.broadcast %cst_40 : f32 to vector<8x128xf32>
    %146 = arith.addf %145, %144 : vector<8x128xf32>
    %147 = arith.divf %145, %146 : vector<8x128xf32>
    %148 = arith.select %13, %142, %147 : vector<8x128xi1>, vector<8x128xf32>
    %149 = vector.extract_strided_slice %148 {offsets = [0, 0], sizes = [8, 32], strides = [1, 1]} : vector<8x128xf32> to vector<8x32xf32>
    %150 = vector.extract_strided_slice %148 {offsets = [0, 32], sizes = [8, 32], strides = [1, 1]} : vector<8x128xf32> to vector<8x32xf32>
    %151 = vector.extract_strided_slice %148 {offsets = [0, 64], sizes = [8, 32], strides = [1, 1]} : vector<8x128xf32> to vector<8x32xf32>
    %152 = vector.extract_strided_slice %148 {offsets = [0, 96], sizes = [8, 32], strides = [1, 1]} : vector<8x128xf32> to vector<8x32xf32>
    %153 = arith.mulf %150, %131 : vector<8x32xf32>
    %154 = arith.mulf %149, %151 : vector<8x32xf32>
    %155 = arith.addf %153, %154 : vector<8x32xf32>
    %156 = math.tanh %155 : vector<8x32xf32>
    %157 = arith.mulf %152, %156 : vector<8x32xf32>
    %158 = arith.index_cast %137 : i32 to index
    %c0_41 = arith.constant 0 : index
    %159 = vector.load %arg12[%158, %c0_41] : memref<64x32xf32, #tpu.memory_space<vmem>>, vector<8x32xf32>
    tpu.vector_store %arg12[%158, %c0_41], %157 {strides = array<i32>} : memref<64x32xf32, #tpu.memory_space<vmem>>, vector<8x32xf32>,
    %c6_i32 = arith.constant 6 : i32
    %c8_i32_42 = arith.constant 8 : i32
    %160 = arith.muli %c6_i32, %c8_i32_42 : i32
    %161 = tpu.assume_multiple %160, 8 : i32
    %162 = arith.index_cast %161 : i32 to index
    %c0_43 = arith.constant 0 : index
    %163 = vector.load %arg11[%162, %c0_43] : memref<64x128xf32, #tpu.memory_space<vmem>>, vector<8x128xf32>
    %cst_44 = arith.constant dense<0.000000e+00> : vector<8x128xf32>
    %164 = tpu.matmul %157, %7, %cst_44 {dimension_numbers = #tpu.dot_dimension_numbers<[1], [0], [0], [1], [0, 0, 1, 1], [], []>} : vector<8x32xf32>, vector<32x128xf32>, vector<8x128xf32> -> vector<8x128xf32>
    %165 = arith.addf %163, %164 : vector<8x128xf32>
    %166 = math.tanh %165 : vector<8x128xf32>
    %167 = arith.negf %165 : vector<8x128xf32>
    %168 = math.exp %167 : vector<8x128xf32>
    %cst_45 = arith.constant 1.000000e+00 : f32
    %169 = vector.broadcast %cst_45 : f32 to vector<8x128xf32>
    %170 = arith.addf %169, %168 : vector<8x128xf32>
    %171 = arith.divf %169, %170 : vector<8x128xf32>
    %172 = arith.select %13, %166, %171 : vector<8x128xi1>, vector<8x128xf32>
    %173 = vector.extract_strided_slice %172 {offsets = [0, 0], sizes = [8, 32], strides = [1, 1]} : vector<8x128xf32> to vector<8x32xf32>
    %174 = vector.extract_strided_slice %172 {offsets = [0, 32], sizes = [8, 32], strides = [1, 1]} : vector<8x128xf32> to vector<8x32xf32>
    %175 = vector.extract_strided_slice %172 {offsets = [0, 64], sizes = [8, 32], strides = [1, 1]} : vector<8x128xf32> to vector<8x32xf32>
    %176 = vector.extract_strided_slice %172 {offsets = [0, 96], sizes = [8, 32], strides = [1, 1]} : vector<8x128xf32> to vector<8x32xf32>
    %177 = arith.mulf %174, %155 : vector<8x32xf32>
    %178 = arith.mulf %173, %175 : vector<8x32xf32>
    %179 = arith.addf %177, %178 : vector<8x32xf32>
    %180 = math.tanh %179 : vector<8x32xf32>
    %181 = arith.mulf %176, %180 : vector<8x32xf32>
    %182 = arith.index_cast %161 : i32 to index
    %c0_46 = arith.constant 0 : index
    %183 = vector.load %arg12[%182, %c0_46] : memref<64x32xf32, #tpu.memory_space<vmem>>, vector<8x32xf32>
    tpu.vector_store %arg12[%182, %c0_46], %181 {strides = array<i32>} : memref<64x32xf32, #tpu.memory_space<vmem>>, vector<8x32xf32>,
    %c7_i32 = arith.constant 7 : i32
    %c8_i32_47 = arith.constant 8 : i32
    %184 = arith.muli %c7_i32, %c8_i32_47 : i32
    %185 = tpu.assume_multiple %184, 8 : i32
    %186 = arith.index_cast %185 : i32 to index
    %c0_48 = arith.constant 0 : index
    %187 = vector.load %arg11[%186, %c0_48] : memref<64x128xf32, #tpu.memory_space<vmem>>, vector<8x128xf32>
    %cst_49 = arith.constant dense<0.000000e+00> : vector<8x128xf32>
    %188 = tpu.matmul %181, %7, %cst_49 {dimension_numbers = #tpu.dot_dimension_numbers<[1], [0], [0], [1], [0, 0, 1, 1], [], []>} : vector<8x32xf32>, vector<32x128xf32>, vector<8x128xf32> -> vector<8x128xf32>
    %189 = arith.addf %187, %188 : vector<8x128xf32>
    %190 = math.tanh %189 : vector<8x128xf32>
    %191 = arith.negf %189 : vector<8x128xf32>
    %192 = math.exp %191 : vector<8x128xf32>
    %cst_50 = arith.constant 1.000000e+00 : f32
    %193 = vector.broadcast %cst_50 : f32 to vector<8x128xf32>
    %194 = arith.addf %193, %192 : vector<8x128xf32>
    %195 = arith.divf %193, %194 : vector<8x128xf32>
    %196 = arith.select %13, %190, %195 : vector<8x128xi1>, vector<8x128xf32>
    %197 = vector.extract_strided_slice %196 {offsets = [0, 0], sizes = [8, 32], strides = [1, 1]} : vector<8x128xf32> to vector<8x32xf32>
    %198 = vector.extract_strided_slice %196 {offsets = [0, 32], sizes = [8, 32], strides = [1, 1]} : vector<8x128xf32> to vector<8x32xf32>
    %199 = vector.extract_strided_slice %196 {offsets = [0, 64], sizes = [8, 32], strides = [1, 1]} : vector<8x128xf32> to vector<8x32xf32>
    %200 = vector.extract_strided_slice %196 {offsets = [0, 96], sizes = [8, 32], strides = [1, 1]} : vector<8x128xf32> to vector<8x32xf32>
    %201 = arith.mulf %198, %179 : vector<8x32xf32>
    %202 = arith.mulf %197, %199 : vector<8x32xf32>
    %203 = arith.addf %201, %202 : vector<8x32xf32>
    %204 = math.tanh %203 : vector<8x32xf32>
    %205 = arith.mulf %200, %204 : vector<8x32xf32>
    %206 = arith.index_cast %185 : i32 to index
    %c0_51 = arith.constant 0 : index
    %207 = vector.load %arg12[%206, %c0_51] : memref<64x32xf32, #tpu.memory_space<vmem>>, vector<8x32xf32>
    tpu.vector_store %arg12[%206, %c0_51], %205 {strides = array<i32>} : memref<64x32xf32, #tpu.memory_space<vmem>>, vector<8x32xf32>,
    %c8_i32_52 = arith.constant 8 : i32
    %c0_53 = arith.constant 0 : index
    %c0_54 = arith.constant 0 : index
    %208 = vector.load %arg9[%c0_53, %c0_54] : memref<8x32xf32, #tpu.memory_space<vmem>>, vector<8x32xf32>
    tpu.vector_store %arg9[%c0_53, %c0_54], %205 {strides = array<i32>} : memref<8x32xf32, #tpu.memory_space<vmem>>, vector<8x32xf32>,
    %c0_55 = arith.constant 0 : index
    %c0_56 = arith.constant 0 : index
    %209 = vector.load %arg10[%c0_55, %c0_56] : memref<8x32xf32, #tpu.memory_space<vmem>>, vector<8x32xf32>
    tpu.vector_store %arg10[%c0_55, %c0_56], %203 {strides = array<i32>} : memref<8x32xf32, #tpu.memory_space<vmem>>, vector<8x32xf32>,
    %c0_57 = arith.constant 0 : index
    %c0_58 = arith.constant 0 : index
    %210 = vector.load %arg12[%c0_57, %c0_58] : memref<64x32xf32, #tpu.memory_space<vmem>>, vector<64x32xf32>
    %c0_59 = arith.constant 0 : index
    %c0_60 = arith.constant 0 : index
    %211 = vector.load %arg4[%c0_59, %c0_60] : memref<32x128xf32, #tpu.memory_space<vmem>>, vector<32x128xf32>
    %cst_61 = arith.constant dense<0.000000e+00> : vector<64x128xf32>
    %212 = tpu.matmul %210, %211, %cst_61 {dimension_numbers = #tpu.dot_dimension_numbers<[1], [0], [0], [1], [0, 0, 1, 1], [], []>} : vector<64x32xf32>, vector<32x128xf32>, vector<64x128xf32> -> vector<64x128xf32>
    %c0_62 = arith.constant 0 : index
    %c0_63 = arith.constant 0 : index
    %213 = vector.load %arg5[%c0_62, %c0_63] : memref<1x128xf32, #tpu.memory_space<vmem>>, vector<1x128xf32>
    %214 = vector.broadcast %213 : vector<1x128xf32> to vector<64x128xf32>
    %215 = arith.addf %212, %214 : vector<64x128xf32>
    %c0_64 = arith.constant 0 : index
    %c0_65 = arith.constant 0 : index
    %216 = vector.load %arg8[%c0_64, %c0_65] : memref<64x128xf32, #tpu.memory_space<vmem>>, vector<64x128xf32>
    tpu.vector_store %arg8[%c0_64, %c0_65], %215 {strides = array<i32>} : memref<64x128xf32, #tpu.memory_space<vmem>>, vector<64x128xf32>,
    return
  }
}

</mosaic_0001>

<bundles_post_ra>
// kernel: tpu_custom_call.1
= control target key start
LH: loop header
LB: loop body
LE: loop exit
PB: predicated region body
PF: predicated region fallthrough
CT: control target
= control target key end

     0   :  { %16 = vsyncpa [#allocation5], 0  ;;  %vm52_vm0 = vcmask 162816   ;;  %vm77_vm1 = vcmask 1043456   ;;  %s2045_s0 = inlined_call_operand.vmem [shape: f32[64,20], index: 0, kind: input, shape index: {}]   ;;  %s2046_s1 = inlined_call_operand.vmem [shape: f32[20,128], index: 1, kind: input, shape index: {}]   ;;  %s2047_s2 = inlined_call_operand.vmem [shape: f32[32,128], index: 2, kind: input, shape index: {}]   ;;  %s2048_s3 = inlined_call_operand.vmem [shape: f32[1,128], index: 3, kind: input, shape index: {}]   ;;  %s2049_s4 = inlined_call_operand.vmem [shape: f32[32,128], index: 4, kind: input, shape index: {}]   ;;  %s2050_s5 = inlined_call_operand.vmem [shape: f32[1,128], index: 5, kind: input, shape index: {}]   ;;  %s2051_s6 = inlined_call_operand.vmem [shape: f32[8,32], index: 6, kind: input, shape index: {}]   ;;  %s2052_s7 = inlined_call_operand.vmem [shape: f32[8,32], index: 7, kind: input, shape index: {}]   ;;  %s2053_s8 = inlined_call_operand.hbm [shape: f32[64,128], index: 8, kind: output, shape index: {0}]   ;;  %s2054_s9 = inlined_call_operand.hbm [shape: f32[8,32], index: 9, kind: output, shape index: {1}]   ;;  %s2055_s10 = inlined_call_operand.hbm [shape: f32[8,32], index: 10, kind: output, shape index: {2}]  }
   0x1   :  { %v42_v0 = vld [vmem:[%s2046_s1] sm:$0xff]  ;;  %v43_v1 = vld [vmem:[%s2046_s1 + $0x8] sm:$0xff]  ;;  %v44_v4 = vld [vmem:[%s2046_s1 + $0x10] sm:$0xf] }
   0x2   :  { %v1486_v2 = vpack.c.bf16 %v43_v1, %v42_v0  ;;  %v38_v3 = vld [vmem:[%s2045_s0 + $0x20] sm:$0xff]  ;;  %v195_v6 = vld [vmem:[%s2047_s2 + $0x8] sm:$0xff] }
   0x3   :  { %1372 = vmatprep.mubr.msk.f32.mxu1 %vm52_vm0, %v38_v3  ;;  %v194_v5 = vld [vmem:[%s2047_s2] sm:$0xff] }
   0x4   :  { %1546 = vmatprep.subr.bf16.mxu1 %v1486_v2  ;;  %1487 = vmatprep.subr.bf16.mxu0 %v1486_v2  ;;  %v34_v7 = vld [vmem:[%s2045_s0] sm:$0xff] }
   0x5   :  { %1548 = vmatpush3.bf16.msra.mxu1 %v1486_v2  ;;  %1489 = vmatpush3.bf16.msra.mxu0 %v1486_v2 }
   0x6   :  { %1547 = vmatprep.subr.msk.mxu1 %vm77_vm1, %v44_v4  ;;  %1364 = vmatprep.subr.msk.mxu0 %vm77_vm1, %v44_v4 }
   0x7   :  { %17 = vsyncpa [#allocation7], 0  ;;  %v39_v8 = vld [vmem:[%s2045_s0 + $0x28] sm:$0xff]  ;;  %v1788_v9 = vpack.c.bf16 %v195_v6, %v194_v5  ;;  %1366 = vmatprep.mubr.msk.f32.mxu0 %vm52_vm0, %v34_v7  ;;  %v40_v10 = vld [vmem:[%s2045_s0 + $0x30] sm:$0xff]  ;;  %v1695_v14 = vmov 0.0|0.0   ;;  %vm1696_vm2 = vmmov 0   ;;  %v198_v32 = vlaneseq }
   0x8   :  { %v196_v11 = vld [vmem:[%s2047_s2 + $0x10] sm:$0xff]  ;;  %v197_v12 = vld [vmem:[%s2047_s2 + $0x18] sm:$0xff]  ;;  %v35_v13 = vld [vmem:[%s2045_s0 + $0x8] sm:$0xff]  ;;  %v1697_v17 = vmov 0.0   ;;  %vm206_vm3 = vcmask 261120   ;;  %s1699_s22 = smov 32  }
   0x9   :  { %1549 = vmatpush3.msk.msra.mxu1 %vm77_vm1, %v44_v4  ;;  %1365 = vmatpush3.msk.msra.mxu0 %vm77_vm1, %v44_v4  ;;  %v41_v15 = vld [vmem:[%s2045_s0 + $0x38] sm:$0xff]  ;;  %v1812_v16 = vpack.c.bf16 %v197_v12, %v196_v11  ;;  %v203_v18 = vld [vmem:[%s2051_s6] sm:$0xff]  ;;  %v199_v34 = vand.u32 127, %v198_v32  ;;  %v36_v1 = vld [vmem:[%s2045_s0 + $0x10] sm:$0xff]  ;;  %s1701_s13 = smov [#allocation6]  }
   0xa   :  { %1373 = vmatmul.mubr.msk.f32.vlgmr.msra.gmra.mrb[0].mxu1 %vm52_vm0, %v39_v8  ;;  %1490 = vmatprep.subr.bf16.mxu1 %v1695_v14  ;;  %v1843_v23 = vld [vmem:[%s2048_s3] ss:$0 sm:$0xff]  ;;  %s1698_s3 = smov 64   ;;  %v37_v2 = vld [vmem:[%s2045_s0 + $0x18] sm:$0xff]  ;;  %s1237_s14 = sshll.u32 %s1701_s13, 4  ;;  %s1238_s14 = int_to_ptr.vmem [resolvable:$true] %s1237_s14 }
   0xb   :  { %1492 = vmatpush3.bf16.msra.mxu1 %v1788_v9  ;;  %1375 = vmatprep.mubr.msk.f32.mxu1 %vm52_vm0, %v40_v10  ;;  %vm200_vm4 = vcmp.ge.s32.totalorder %v199_v34, 64  ;;  %vm201_vm5 = vcmp.lt.s32.totalorder %v199_v34, 96  ;;  %v204_v39 = vld [vmem:[%s2052_s7] sm:$0xff]  ;;  %s1625_s15 = scalar_lea.vmem %s1238_s14, 128  ;;  %p1630_p1 = scmp.lt.s32.totalorder %s1238_s14, %s1238_s14 }
   0xc   :  { %1493 = vmatprep.subr.bf16.mxu1 %v1695_v14  ;;  %1367 = vmatmul.mubr.msk.f32.vlgmr.msra.gmra.mrb[0].mxu0 %vm52_vm0, %v35_v13  ;;  %vm1850_vm6 = vmand %vm200_vm4, %vm201_vm5  ;;  %p1626_p0 = scmp.ne.s32.totalorder %s1238_s14, %s1625_s15  ;;  %p1631_p2 = scmp.lt.s32.totalorder %s1625_s15, %s1625_s15 }
   0xd   :  { %1502 = vmatprep.subr.bf16.mxu0 %v1695_v14  ;;  %1369 = vmatprep.mubr.msk.f32.mxu0 %vm52_vm0, %v36_v1 }
   0xe   :  { %1376 = vmatmul.mubr.msk.f32.gmra.mrb[2].mxu1 %vm52_vm0, %v41_v15  ;;  %1504 = vmatpush3.bf16.msra.mxu0 %v1788_v9  ;;  %p1632_p3 = por %p1631_p2, %p1630_p1 }
   0xf   :  { %1495 = vmatpush3.bf16.msra.mxu1 %v1812_v16  ;;  %1386 = vmatprep.mubr.msk.f32.mxu1 %vm1696_vm2, %v1697_v17 }
  0x10   :  { %1496 = vmatprep.subr.bf16.mxu1 %v1695_v14  ;;  %1505 = vmatprep.subr.bf16.mxu0 %v1695_v14  ;;  %p1633_p4 = pnand %p1632_p3, %p1626_p0 }
  0x11   :  { %1370 = vmatmul.mubr.msk.f32.gmra.mrb[2].mxu0 %vm52_vm0, %v37_v2 }
  0x12   :  { %1387 = vmatmul.mubr.msk.f32.vlgmr.msra.gmra.mrb[4].mxu1 %vm206_vm3, %v203_v18  ;;  %1507 = vmatpush3.bf16.msra.mxu0 %v1812_v16 }
  0x13   :  { %1498 = vmatpush3.bf16.msra.mxu1 %v1788_v9  ;;  %1397 = vmatprep.mubr.msk.f32.mxu1 %vm1696_vm2, %v1697_v17 }
  0x14   :  { %1499 = vmatprep.subr.bf16.mxu1 %v1695_v14  ;;  %1514 = vmatprep.subr.bf16.mxu0 %v1695_v14 }
  0x15   :  { %1408 = vmatprep.mubr.msk.f32.mxu0 %vm1696_vm2, %v1697_v17 }
  0x17   :  { %1501 = vmatpush3.bf16.msra.mxu1 %v1812_v16 }
  0x18   :  { %1508 = vmatprep.subr.bf16.mxu1 %v1695_v14 }
  0xdd   :  { %v1836_v19 = vpop.f32.mrb[0].mxu1 }
  0xde   :  { %v1838_v20 = vpop.f32.mrb[1].mxu1 }
  0xdf   :  { %v1368_v21 = vpop.f32.mrb[0].mxu0 }
  0xe0   :  { %v147_v22 = vpop.f32.mrb[1].mxu0  ;;  %v153_v50 = vadd.f32 %v1368_v21, %v1843_v23 }
  0xe1   :  { %v1845_v24 = vpop.f32.mrb[2].mxu1  ;;  %v148_v26 = vadd.f32 %v1843_v23, %v147_v22 }
  0xe2   :  { %v1847_v25 = vpop.f32.mrb[3].mxu1 }
  0xe4   :  { %v1371_v6 = vpop.f32.mrb[2].mxu0 }
  0xe5   :  { %v276_v27 = vpop.f32.mrb[4].mxu1  ;;  %v157_v7 = vpop.f32.mrb[3].mxu0 }
  0xe6   :  { %v280_v28 = vadd.f32 %v276_v27, %v148_v26  ;;  %v1388_v29 = vpop.f32.mrb[5].mxu1  ;;  %v158_v10 = vadd.f32 %v1843_v23, %v157_v7 }
  0xe8   :  { %v1273_v30 = vmul.f32 -1.442695, %v280_v28 }
  0xea   :  { %1561 = vpow2.f32 %v1273_v30 }
  0xeb   :  { %1563 = vtanh.f32 %v280_v28 }
  0xf4   :  { %v1562_v31 = vpop.eup %1561 }
  0xf5   :  { %v285_v33 = vadd.f32 1.0, %v1562_v31  ;;  %v1564_v36 = vpop.eup %1563 }
  0xf7   :  { %1565 = vrcp.f32 %v285_v33 }
 0x101   :  { %v1566_v37 = vpop.eup %1565 }
 0x102   :  { %v288_v38 = vsel %vm1850_vm6, %v1564_v36, %v1566_v37 }
 0x103   :  { %295 = vrot.lane.b32.xlu0 %v288_v38, %s1698_s3 }
 0x107   :  { %290 = vrot.lane.b32.xlu0 %v204_v39, %s1699_s22 }
 0x175   :  { %v296_v40 = vpop.permute.xlu0 %295 }
 0x176   :  { %v298_v41 = vmul.f32 %v296_v40, %v288_v38 }
 0x178   :  { %300 = vrot.lane.b32.xlu1 %v298_v41, %s1699_s22 }
 0x179   :  { %v291_v42 = vpop.permute.xlu0 %290 }
 0x17a   :  { %v293_v43 = vmul.f32 %v291_v42, %v288_v38 }
 0x1ea   :  { %v301_v44 = vpop.permute.xlu1 %300 }
 0x1eb   :  { %v303_v45 = vadd.f32 %v301_v44, %v293_v43 }
 0x1ed   :  { %1567 = vtanh.f32 %v303_v45 }
 0x1f7   :  { %v1568_v46 = vpop.eup %1567 }
 0x1f8   :  { %306 = vrot.lane.b32.xlu1 %v1568_v46, %s1698_s3 }
 0x26a   :  { %v307_v47 = vpop.permute.xlu1 %306 }
 0x26b   :  { %v309_v48 = vmul.f32 %v307_v47, %v288_v38  ;;  %v163_v38 = vadd.f32 %v1371_v6, %v1843_v23 }
 0x26d   :  { %311 = vrot.lane.b32.xlu0 %v309_v48, %s1699_s22 }
 0x2df   :  { %v312_v49 = vpop.permute.xlu0 %311 }
 0x2e0   :  { %314 = vst.msk [vmem:[#allocation3] sm:$0xff] %vm206_vm3, %v312_v49  ;;  %1398 = vmatmul.mubr.msk.f32.vlgmr.msra.gmra.mrb[6].mxu1 %vm206_vm3, %v312_v49 }
 0x2e1   :  { %1510 = vmatpush3.bf16.msra.mxu1 %v1788_v9  ;;  %1419 = vmatprep.mubr.msk.f32.mxu1 %vm1696_vm2, %v1697_v17 }
 0x2e2   :  { %1511 = vmatprep.subr.bf16.mxu1 %v1695_v14 }
 0x2e5   :  { %1513 = vmatpush3.bf16.msra.mxu1 %v1812_v16 }
 0x2e6   :  { %1520 = vmatprep.subr.bf16.mxu1 %v1695_v14 }
 0x3b3   :  { %v385_v51 = vpop.f32.mrb[6].mxu1 }
 0x3b4   :  { %v389_v52 = vadd.f32 %v385_v51, %v153_v50  ;;  %v1399_v53 = vpop.f32.mrb[7].mxu1 }
 0x3b6   :  { %v1275_v54 = vmul.f32 -1.442695, %v389_v52 }
 0x3b8   :  { %1569 = vpow2.f32 %v1275_v54 }
 0x3b9   :  { %1571 = vtanh.f32 %v389_v52 }
 0x3c2   :  { %v1570_v55 = vpop.eup %1569 }
 0x3c3   :  { %v394_v56 = vadd.f32 1.0, %v1570_v55  ;;  %v1572_v57 = vpop.eup %1571 }
 0x3c5   :  { %1573 = vrcp.f32 %v394_v56 }
 0x3cf   :  { %v1574_v58 = vpop.eup %1573 }
 0x3d0   :  { %v397_v59 = vsel %vm1850_vm6, %v1572_v57, %v1574_v58  ;;  %v168_v57 = vadd.f32 %v1843_v23, %v1838_v20 }
 0x3d1   :  { %400 = vrot.lane.b32.xlu1 %v397_v59, %s1698_s3  ;;  %v398_v62 = vmul.f32 %v397_v59, %v303_v45 }
 0x443   :  { %v401_v60 = vpop.permute.xlu1 %400 }
 0x444   :  { %v403_v61 = vmul.f32 %v401_v60, %v397_v59 }
 0x446   :  { %405 = vrot.lane.b32.xlu0 %v403_v61, %s1699_s22 }
 0x4b8   :  { %v406_v63 = vpop.permute.xlu0 %405 }
 0x4b9   :  { %v408_v0 = vadd.f32 %v406_v63, %v398_v62 }
 0x4bb   :  { %1575 = vtanh.f32 %v408_v0 }
 0x4c5   :  { %v1576_v3 = vpop.eup %1575 }
 0x4c6   :  { %411 = vrot.lane.b32.xlu1 %v1576_v3, %s1698_s3 }
 0x538   :  { %v412_v4 = vpop.permute.xlu1 %411 }
 0x539   :  { %v414_v5 = vmul.f32 %v412_v4, %v397_v59 }
 0x53b   :  { %416 = vrot.lane.b32.xlu0 %v414_v5, %s1699_s22 }
 0x5ad   :  { %v417_v8 = vpop.permute.xlu0 %416 }
 0x5ae   :  { %420 = vst.msk [vmem:[#allocation3 + $0x8] sm:$0xff] %vm206_vm3, %v417_v8  ;;  %1409 = vmatmul.mubr.msk.f32.vlgmr.msra.gmra.mrb[4].mxu0 %vm206_vm3, %v417_v8 }
 0x5af   :  { %1516 = vmatpush3.bf16.msra.mxu0 %v1788_v9  ;;  %1430 = vmatprep.mubr.msk.f32.mxu0 %vm1696_vm2, %v1697_v17 }
 0x5b0   :  { %1517 = vmatprep.subr.bf16.mxu0 %v1695_v14 }
 0x5b3   :  { %1519 = vmatpush3.bf16.msra.mxu0 %v1812_v16 }
 0x5b4   :  { %1526 = vmatprep.subr.bf16.mxu0 %v1695_v14 }
 0x681   :  { %v491_v11 = vpop.f32.mrb[4].mxu0 }
 0x682   :  { %v495_v12 = vadd.f32 %v491_v11, %v158_v10  ;;  %v1410_v13 = vpop.f32.mrb[5].mxu0 }
 0x684   :  { %v1277_v15 = vmul.f32 -1.442695, %v495_v12 }
 0x686   :  { %1577 = vpow2.f32 %v1277_v15 }
 0x687   :  { %1579 = vtanh.f32 %v495_v12  ;;  %v173_v12 = vadd.f32 %v1836_v19, %v1843_v23 }
 0x690   :  { %v1578_v18 = vpop.eup %1577 }
 0x691   :  { %v500_v21 = vadd.f32 1.0, %v1578_v18  ;;  %v1580_v22 = vpop.eup %1579 }
 0x693   :  { %1581 = vrcp.f32 %v500_v21 }
 0x69d   :  { %v1582_v26 = vpop.eup %1581 }
 0x69e   :  { %v503_v27 = vsel %vm1850_vm6, %v1580_v22, %v1582_v26 }
 0x69f   :  { %506 = vrot.lane.b32.xlu1 %v503_v27, %s1698_s3  ;;  %v504_v30 = vmul.f32 %v503_v27, %v408_v0 }
 0x711   :  { %v507_v28 = vpop.permute.xlu1 %506 }
 0x712   :  { %v509_v29 = vmul.f32 %v507_v28, %v503_v27 }
 0x714   :  { %511 = vrot.lane.b32.xlu0 %v509_v29, %s1699_s22 }
 0x786   :  { %v512_v31 = vpop.permute.xlu0 %511 }
 0x787   :  { %v514_v32 = vadd.f32 %v512_v31, %v504_v30  ;;  %v1071_v30 = vld [vmem:[%s2049_s4] sm:$0xff]  ;;  %v1072_v31 = vld [vmem:[%s2049_s4 + $0x8] sm:$0xff] }
 0x789   :  { %1583 = vtanh.f32 %v514_v32 }
 0x793   :  { %v1584_v33 = vpop.eup %1583 }
 0x794   :  { %517 = vrot.lane.b32.xlu1 %v1584_v33, %s1698_s3 }
 0x806   :  { %v518_v34 = vpop.permute.xlu1 %517 }
 0x807   :  { %v520_v36 = vmul.f32 %v518_v34, %v503_v27 }
 0x809   :  { %522 = vrot.lane.b32.xlu0 %v520_v36, %s1699_s22 }
 0x87b   :  { %v523_v37 = vpop.permute.xlu0 %522 }
 0x87c   :  { %526 = vst.msk [vmem:[#allocation3 + $0x10] sm:$0xff] %vm206_vm3, %v523_v37  ;;  %1420 = vmatmul.mubr.msk.f32.vlgmr.msra.gmra.mrb[8].mxu1 %vm206_vm3, %v523_v37  ;;  %v1073_v37 = vld [vmem:[%s2049_s4 + $0x10] sm:$0xff] }
 0x87d   :  { %1522 = vmatpush3.bf16.msra.mxu1 %v1788_v9  ;;  %1441 = vmatprep.mubr.msk.f32.mxu1 %vm1696_vm2, %v1697_v17 }
 0x87e   :  { %1523 = vmatprep.subr.bf16.mxu1 %v1695_v14 }
 0x881   :  { %1525 = vmatpush3.bf16.msra.mxu1 %v1812_v16 }
 0x882   :  { %1532 = vmatprep.subr.bf16.mxu1 %v1695_v14 }
 0x94f   :  { %v597_v39 = vpop.f32.mrb[8].mxu1 }
 0x950   :  { %v601_v40 = vadd.f32 %v597_v39, %v163_v38  ;;  %v1421_v41 = vpop.f32.mrb[9].mxu1  ;;  %v1074_v38 = vld [vmem:[%s2049_s4 + $0x18] sm:$0xff] }
 0x951   :  { %v1542_v39 = vpack.c.bf16 %v1074_v38, %v1073_v37  ;;  %v1063_v41 = vld [vmem:[#allocation3] sm:$0xff] }
 0x952   :  { %v1279_v42 = vmul.f32 -1.442695, %v601_v40 }
 0x954   :  { %1585 = vpow2.f32 %v1279_v42  ;;  %v1064_v42 = vld [vmem:[#allocation3 + $0x8] sm:$0xff] }
 0x955   :  { %1587 = vtanh.f32 %v601_v40 }
 0x95e   :  { %v1586_v43 = vpop.eup %1585 }
 0x95f   :  { %v606_v44 = vadd.f32 1.0, %v1586_v43  ;;  %v1588_v45 = vpop.eup %1587  ;;  %v1065_v43 = vld [vmem:[#allocation3 + $0x10] sm:$0xff] }
 0x961   :  { %1589 = vrcp.f32 %v606_v44 }
 0x96b   :  { %v1590_v46 = vpop.eup %1589 }
 0x96c   :  { %v609_v47 = vsel %vm1850_vm6, %v1588_v45, %v1590_v46 }
 0x96d   :  { %612 = vrot.lane.b32.xlu1 %v609_v47, %s1698_s3  ;;  %v610_v50 = vmul.f32 %v609_v47, %v514_v32  ;;  %v1538_v32 = vpack.c.bf16 %v1072_v31, %v1071_v30 }
 0x9df   :  { %v613_v48 = vpop.permute.xlu1 %612 }
 0x9e0   :  { %v615_v49 = vmul.f32 %v613_v48, %v609_v47 }
 0x9e2   :  { %617 = vrot.lane.b32.xlu0 %v615_v49, %s1699_s22 }
 0xa54   :  { %v618_v51 = vpop.permute.xlu0 %617 }
 0xa55   :  { %v620_v52 = vadd.f32 %v618_v51, %v610_v50 }
 0xa57   :  { %1591 = vtanh.f32 %v620_v52 }
 0xa61   :  { %v1592_v53 = vpop.eup %1591 }
 0xa62   :  { %623 = vrot.lane.b32.xlu1 %v1592_v53, %s1698_s3 }
 0xad4   :  { %v624_v54 = vpop.permute.xlu1 %623 }
 0xad5   :  { %v626_v55 = vmul.f32 %v624_v54, %v609_v47  ;;  %v178_v47 = vadd.f32 %v1843_v23, %v1847_v25 }
 0xad7   :  { %628 = vrot.lane.b32.xlu0 %v626_v55, %s1699_s22 }
 0xb49   :  { %v629_v56 = vpop.permute.xlu0 %628 }
 0xb4a   :  { %632 = vst.msk [vmem:[#allocation3 + $0x18] sm:$0xff] %vm206_vm3, %v629_v56  ;;  %1431 = vmatmul.mubr.msk.f32.vlgmr.msra.gmra.mrb[6].mxu0 %vm206_vm3, %v629_v56 }
 0xb4b   :  { %1528 = vmatpush3.bf16.msra.mxu0 %v1788_v9  ;;  %1452 = vmatprep.mubr.msk.f32.mxu0 %vm1696_vm2, %v1697_v17 }
 0xb4c   :  { %1529 = vmatprep.subr.bf16.mxu0 %v1695_v14 }
 0xb4f   :  { %1531 = vmatpush3.bf16.msra.mxu0 %v1812_v16 }
 0xb50   :  { %1539 = vmatprep.subr.bf16.mxu0 %v1538_v32 }
 0xb51   :  { %v1066_v44 = vld [vmem:[#allocation3 + $0x18] sm:$0xff] }
 0xc1d   :  { %v703_v58 = vpop.f32.mrb[6].mxu0 }
 0xc1e   :  { %v707_v59 = vadd.f32 %v703_v58, %v168_v57  ;;  %v1432_v60 = vpop.f32.mrb[7].mxu0 }
 0xc20   :  { %v1281_v61 = vmul.f32 -1.442695, %v707_v59 }
 0xc22   :  { %1593 = vpow2.f32 %v1281_v61 }
 0xc23   :  { %1595 = vtanh.f32 %v707_v59 }
 0xc2c   :  { %v1594_v62 = vpop.eup %1593 }
 0xc2d   :  { %v712_v63 = vadd.f32 1.0, %v1594_v62  ;;  %v1596_v0 = vpop.eup %1595 }
 0xc2f   :  { %1597 = vrcp.f32 %v712_v63 }
 0xc39   :  { %v1598_v1 = vpop.eup %1597 }
 0xc3a   :  { %v715_v2 = vsel %vm1850_vm6, %v1596_v0, %v1598_v1 }
 0xc3b   :  { %718 = vrot.lane.b32.xlu1 %v715_v2, %s1698_s3  ;;  %v716_v20 = vmul.f32 %v715_v2, %v620_v52  ;;  %v1977_v52 = vld [vmem:[%s2050_s5] ss:$0 sm:$0xff]  ;;  %s1700_s5 = smov 96  }
 0xcad   :  { %v719_v3 = vpop.permute.xlu1 %718 }
 0xcae   :  { %v721_v4 = vmul.f32 %v719_v3, %v715_v2 }
 0xcb0   :  { %723 = vrot.lane.b32.xlu0 %v721_v4, %s1699_s22 }
 0xd22   :  { %v724_v5 = vpop.permute.xlu0 %723 }
 0xd23   :  { %v726_v6 = vadd.f32 %v724_v5, %v716_v20 }
 0xd25   :  { %1599 = vtanh.f32 %v726_v6 }
 0xd2f   :  { %v1600_v7 = vpop.eup %1599 }
 0xd30   :  { %729 = vrot.lane.b32.xlu1 %v1600_v7, %s1698_s3 }
 0xda2   :  { %v730_v8 = vpop.permute.xlu1 %729 }
 0xda3   :  { %v732_v10 = vmul.f32 %v730_v8, %v715_v2 }
 0xda5   :  { %734 = vrot.lane.b32.xlu0 %v732_v10, %s1699_s22 }
 0xe17   :  { %v735_v11 = vpop.permute.xlu0 %734 }
 0xe18   :  { %738 = vst.msk [vmem:[#allocation3 + $0x20] sm:$0xff] %vm206_vm3, %v735_v11  ;;  %1442 = vmatmul.mubr.msk.f32.vlgmr.msra.gmra.mrb[10].mxu1 %vm206_vm3, %v735_v11 }
 0xe19   :  { %1534 = vmatpush3.bf16.msra.mxu1 %v1788_v9  ;;  %1463 = vmatprep.mubr.msk.f32.mxu1 %vm1696_vm2, %v1697_v17 }
 0xe1a   :  { %1535 = vmatprep.subr.bf16.mxu1 %v1695_v14 }
 0xe1d   :  { %1537 = vmatpush3.bf16.msra.mxu1 %v1812_v16 }
 0xe1f   :  { %v1067_v45 = vld [vmem:[#allocation3 + $0x20] sm:$0xff] }
 0xeeb   :  { %v809_v13 = vpop.f32.mrb[10].mxu1 }
 0xeec   :  { %v813_v15 = vadd.f32 %v809_v13, %v173_v12  ;;  %v1443_v18 = vpop.f32.mrb[11].mxu1 }
 0xeed   :  { %v183_v18 = vadd.f32 %v1845_v24, %v1843_v23 }
 0xeee   :  { %v1283_v21 = vmul.f32 -1.442695, %v813_v15 }
 0xef0   :  { %1601 = vpow2.f32 %v1283_v21 }
 0xef1   :  { %1603 = vtanh.f32 %v813_v15 }
 0xefa   :  { %v1602_v22 = vpop.eup %1601 }
 0xefb   :  { %v818_v26 = vadd.f32 1.0, %v1602_v22  ;;  %v1604_v9 = vpop.eup %1603 }
 0xefd   :  { %1605 = vrcp.f32 %v818_v26 }
 0xf07   :  { %v1606_v27 = vpop.eup %1605 }
 0xf08   :  { %v821_v17 = vsel %vm1850_vm6, %v1604_v9, %v1606_v27 }
 0xf09   :  { %824 = vrot.lane.b32.xlu1 %v821_v17, %s1698_s3  ;;  %v822_v19 = vmul.f32 %v821_v17, %v726_v6 }
 0xf7b   :  { %v825_v14 = vpop.permute.xlu1 %824 }
 0xf7c   :  { %v827_v16 = vmul.f32 %v825_v14, %v821_v17 }
 0xf7e   :  { %829 = vrot.lane.b32.xlu0 %v827_v16, %s1699_s22 }
 0xff0   :  { %v830_v28 = vpop.permute.xlu0 %829 }
 0xff1   :  { %v1947_v29 = vadd.f32 %v830_v28, %v822_v19 }
 0xff3   :  { %1607 = vtanh.f32 %v1947_v29 }
 0xffd   :  { %v1608_v33 = vpop.eup %1607 }
 0xffe   :  { %835 = vrot.lane.b32.xlu1 %v1608_v33, %s1698_s3 }
0x1070   :  { %v836_v34 = vpop.permute.xlu1 %835 }
0x1071   :  { %v838_v36 = vmul.f32 %v836_v34, %v821_v17 }
0x1073   :  { %840 = vrot.lane.b32.xlu0 %v838_v36, %s1699_s22 }
0x10e5   :  { %v841_v40 = vpop.permute.xlu0 %840 }
0x10e6   :  { %844 = vst.msk [vmem:[#allocation3 + $0x28] sm:$0xff] %vm206_vm3, %v841_v40  ;;  %1453 = vmatmul.mubr.msk.f32.vlgmr.msra.gmra.mrb[8].mxu0 %vm206_vm3, %v841_v40 }
0x10e7   :  { %1541 = vmatpush3.bf16.msra.mxu0 %v1538_v32  ;;  %1474 = vmatprep.mubr.msk.f32.mxu0 %vm206_vm3, %v1063_v41 }
0x10e8   :  { %1543 = vmatprep.subr.bf16.mxu0 %v1542_v39 }
0x10eb   :  { %1545 = vmatpush3.bf16.msra.mxu0 %v1542_v39 }
0x10ed   :  { %v1068_v46 = vld [vmem:[#allocation3 + $0x28] sm:$0xff] }
0x10ee   :  { %1475 = vmatmul.mubr.msk.f32.vlgmr.msra.gmra.mrb[10].mxu0 %vm206_vm3, %v1064_v42 }
0x10ef   :  { %1477 = vmatprep.mubr.msk.f32.mxu0 %vm206_vm3, %v1065_v43 }
0x10f2   :  { %1478 = vmatmul.mubr.msk.f32.gmra.mrb[12].mxu0 %vm206_vm3, %v1066_v44 }
0x10f3   :  { %1480 = vmatprep.mubr.msk.f32.mxu0 %vm206_vm3, %v1067_v45 }
0x10f6   :  { %1481 = vmatmul.mubr.msk.f32.gmra.mrb[14].mxu0 %vm206_vm3, %v1068_v46 }
0x11b9   :  { %v915_v48 = vpop.f32.mrb[8].mxu0 }
0x11ba   :  { %v919_v49 = vadd.f32 %v915_v48, %v178_v47  ;;  %v1454_v50 = vpop.f32.mrb[9].mxu0 }
0x11bc   :  { %v1285_v51 = vmul.f32 -1.442695, %v919_v49 }
0x11be   :  { %1609 = vpow2.f32 %v1285_v51 }
0x11bf   :  { %1611 = vtanh.f32 %v919_v49 }
0x11c1   :  { %v1476_v53 = vpop.f32.mrb[10].mxu0 }
0x11c2   :  { %v1178_v54 = vadd.f32 %v1476_v53, %v1977_v52  ;;  %v1172_v55 = vpop.f32.mrb[11].mxu0 }
0x11c3   :  { %v1173_v56 = vadd.f32 %v1977_v52, %v1172_v55 }
0x11c4   :  { %1212 = vst [vmem:[#allocation4 + $0x8] sm:$0xff] %v1178_v54 }
0x11c5   :  { %1211 = vst [vmem:[#allocation4] sm:$0xff] %v1173_v56  ;;  %v1479_v57 = vpop.f32.mrb[12].mxu0 }
0x11c6   :  { %v1188_v25 = vadd.f32 %v1479_v57, %v1977_v52  ;;  %v1182_v58 = vpop.f32.mrb[13].mxu0 }
0x11c7   :  { %v1183_v59 = vadd.f32 %v1977_v52, %v1182_v58 }
0x11c8   :  { %v1610_v60 = vpop.eup %1609  ;;  %1214 = vst [vmem:[#allocation4 + $0x18] sm:$0xff] %v1188_v25 }
0x11c9   :  { %v924_v61 = vadd.f32 1.0, %v1610_v60  ;;  %1213 = vst [vmem:[#allocation4 + $0x10] sm:$0xff] %v1183_v59  ;;  %v1482_v62 = vpop.f32.mrb[14].mxu0  ;;  %v1612_v2 = vpop.eup %1611 }
0x11ca   :  { %v1198_v63 = vadd.f32 %v1482_v62, %v1977_v52  ;;  %v1192_v0 = vpop.f32.mrb[15].mxu0 }
0x11cb   :  { %1613 = vrcp.f32 %v924_v61  ;;  %v1193_v1 = vadd.f32 %v1977_v52, %v1192_v0 }
0x11cc   :  { %1216 = vst [vmem:[#allocation4 + $0x28] sm:$0xff] %v1198_v63 }
0x11cd   :  { %1215 = vst [vmem:[#allocation4 + $0x20] sm:$0xff] %v1193_v1 }
0x11d5   :  { %v1614_v3 = vpop.eup %1613 }
0x11d6   :  { %v927_v4 = vsel %vm1850_vm6, %v1612_v2, %v1614_v3 }
0x11d7   :  { %930 = vrot.lane.b32.xlu1 %v927_v4, %s1698_s3  ;;  %v928_v6 = vmul.f32 %v927_v4, %v1947_v29 }
0x1249   :  { %v931_v20 = vpop.permute.xlu1 %930 }
0x124a   :  { %v933_v5 = vmul.f32 %v931_v20, %v927_v4 }
0x124c   :  { %935 = vrot.lane.b32.xlu0 %v933_v5, %s1699_s22 }
0x12be   :  { %v936_v7 = vpop.permute.xlu0 %935 }
0x12bf   :  { %v938_v8 = vadd.f32 %v936_v7, %v928_v6 }
0x12c1   :  { %1615 = vtanh.f32 %v938_v8 }
0x12cb   :  { %v1616_v10 = vpop.eup %1615 }
0x12cc   :  { %941 = vrot.lane.b32.xlu1 %v1616_v10, %s1698_s3 }
0x133e   :  { %v942_v11 = vpop.permute.xlu1 %941 }
0x133f   :  { %v944_v12 = vmul.f32 %v942_v11, %v927_v4 }
0x1341   :  { %946 = vrot.lane.b32.xlu0 %v944_v12, %s1699_s22 }
0x13b3   :  { %v947_v13 = vpop.permute.xlu0 %946 }
0x13b4   :  { %950 = vst.msk [vmem:[#allocation3 + $0x30] sm:$0xff] %vm206_vm3, %v947_v13  ;;  %1464 = vmatmul.mubr.msk.f32.vlgmr.msra.gmra.mrb[12].mxu1 %vm206_vm3, %v947_v13 }
0x13bb   :  { %v1069_v15 = vld [vmem:[#allocation3 + $0x30] sm:$0xff] }
0x13bc   :  { %1483 = vmatprep.mubr.msk.f32.mxu0 %vm206_vm3, %v1069_v15 }
0x1487   :  { %v1021_v21 = vpop.f32.mrb[12].mxu1 }
0x1488   :  { %v1025_v22 = vadd.f32 %v1021_v21, %v183_v18  ;;  %v1465_v26 = vpop.f32.mrb[13].mxu1 }
0x148a   :  { %v1287_v9 = vmul.f32 -1.442695, %v1025_v22 }
0x148c   :  { %1617 = vpow2.f32 %v1287_v9 }
0x148d   :  { %1619 = vtanh.f32 %v1025_v22 }
0x1496   :  { %v1618_v27 = vpop.eup %1617 }
0x1497   :  { %v1030_v17 = vadd.f32 1.0, %v1618_v27  ;;  %v1620_v14 = vpop.eup %1619 }
0x1499   :  { %1621 = vrcp.f32 %v1030_v17 }
0x14a3   :  { %v1622_v16 = vpop.eup %1621 }
0x14a4   :  { %v1033_v19 = vsel %vm1850_vm6, %v1620_v14, %v1622_v16 }
0x14a5   :  { %1036 = vrot.lane.b32.xlu1 %v1033_v19, %s1698_s3  ;;  %v1034_v23 = vmul.f32 %v1033_v19, %v938_v8 }
0x1517   :  { %v1037_v28 = vpop.permute.xlu1 %1036 }
0x1518   :  { %v1039_v29 = vmul.f32 %v1037_v28, %v1033_v19 }
0x151a   :  { %1041 = vrot.lane.b32.xlu0 %v1039_v29, %s1699_s22 }
0x158c   :  { %v1042_v24 = vpop.permute.xlu0 %1041 }
0x158d   :  { %v1044_v30 = vadd.f32 %v1042_v24, %v1034_v23 }
0x158f   :  { %1623 = vtanh.f32 %v1044_v30 }
0x1599   :  { %v1624_v31 = vpop.eup %1623 }
0x159a   :  { %1047 = vrot.lane.b32.xlu1 %v1624_v31, %s1698_s3 }
0x159e   :  { %1059 = vrot.lane.b32.xlu1 %v1044_v30, %s1700_s5 }
0x160c   :  { %v1048_v32 = vpop.permute.xlu1 %1047 }
0x160d   :  { %v1050_v33 = vmul.f32 %v1048_v32, %v1033_v19 }
0x160f   :  { %1052 = vrot.lane.b32.xlu0 %v1050_v33, %s1699_s22 }
0x1610   :  { %v1060_v35 = vpop.permute.xlu1 %1059 }
0x1611   :  { %1062 = vst.msk [vmem:[#allocation8] sm:$0xff] %vm206_vm3, %v1060_v35 }
0x1681   :  { %v1053_v34 = vpop.permute.xlu0 %1052 }
0x1682   :  { %1056 = vst.msk [vmem:[#allocation3 + $0x38] sm:$0xff] %vm206_vm3, %v1053_v34  ;;  %1057 = vst.msk [vmem:[#allocation6] sm:$0xff] %vm206_vm3, %v1053_v34 }
0x1689   :  { %v1070_v36 = vld [vmem:[#allocation3 + $0x38] sm:$0xff] }
0x168a   :  { %1484 = vmatmul.mubr.msk.f32.gmra.mrb[16].mxu0 %vm206_vm3, %v1070_v36 }
0x168b   :  { %1636 = shalt.err (!%p1633_p4)
}
0x168c   :  { %s1637_s2 = scalar_lea.hbm %s2054_s9, 128 }
0x168d   :  { %p1638_p5 = scmp.ne.s32.totalorder %s2054_s9, %s1637_s2  ;;  %p1641_p6 = scmp.lt.u32.totalorder %s1637_s2, %s2054_s9 }
0x168f   :  { %p1643_p7 = pnand %p1641_p6, %p1638_p5 }
0x1691   :  { %1646 = shalt.err (!%p1643_p7)
}
0x1692   :  { %1240 = dma.vmem_to_hbm [thread:$0]  %s1238_s14, 128, %s2054_s9, [#allocation7]  }
0x1693   :  { %s1702_s22 = smov [#allocation8]  }
0x1694   :  { %s1247_s7 = sshll.u32 %s1702_s22, 4  ;;  %s1248_s7 = int_to_ptr.vmem [resolvable:$true] %s1247_s7 }
0x1695   :  { %s1647_s23 = scalar_lea.vmem %s1248_s7, 128  ;;  %p1652_p9 = scmp.lt.s32.totalorder %s1248_s7, %s1248_s7 }
0x1696   :  { %p1648_p8 = scmp.ne.s32.totalorder %s1248_s7, %s1647_s23  ;;  %p1653_p10 = scmp.lt.s32.totalorder %s1647_s23, %s1647_s23 }
0x1698   :  { %p1654_p11 = por %p1653_p10, %p1652_p9 }
0x169a   :  { %p1655_p12 = pnand %p1654_p11, %p1648_p8 }
0x169c   :  { %1658 = shalt.err (!%p1655_p12)
}
0x169d   :  { %s1659_s0 = scalar_lea.hbm %s2055_s10, 128 }
0x169e   :  { %p1660_p13 = scmp.ne.s32.totalorder %s2055_s10, %s1659_s0  ;;  %p1663_p0 = scmp.lt.u32.totalorder %s1659_s0, %s2055_s10 }
0x16a0   :  { %p1665_p1 = pnand %p1663_p0, %p1660_p13 }
0x16a2   :  { %1668 = shalt.err (!%p1665_p1)
}
0x16a3   :  { %1250 = dma.vmem_to_hbm [thread:$0]  %s1248_s7, 128, %s2055_s10, [#allocation7]  }
0x16a4   :  { %s1703_s30 = smov [#allocation4]  }
0x16a5   :  { %s1224_s11 = sshll.u32 %s1703_s30, 4  ;;  %s1225_s11 = int_to_ptr.vmem [resolvable:$true] %s1224_s11 }
0x16a6   :  { %s1669_s4 = scalar_lea.vmem %s1225_s11, 1024  ;;  %p1674_p3 = scmp.lt.s32.totalorder %s1225_s11, %s1225_s11 }
0x16a7   :  { %p1670_p2 = scmp.ne.s32.totalorder %s1225_s11, %s1669_s4  ;;  %p1675_p4 = scmp.lt.s32.totalorder %s1669_s4, %s1669_s4 }
0x16a9   :  { %p1676_p5 = por %p1675_p4, %p1674_p3 }
0x16ab   :  { %p1677_p6 = pnand %p1676_p5, %p1670_p2 }
0x175d   :  { %v1485_v37 = vpop.f32.mrb[16].mxu0 }
0x175e   :  { %v1208_v38 = vadd.f32 %v1485_v37, %v1977_v52  ;;  %v1202_v39 = vpop.f32.mrb[17].mxu0 }
0x175f   :  { %v1203_v40 = vadd.f32 %v1977_v52, %v1202_v39 }
0x1760   :  { %1218 = vst [vmem:[#allocation4 + $0x38] sm:$0xff] %v1208_v38 }
0x1761   :  { %1217 = vst [vmem:[#allocation4 + $0x30] sm:$0xff] %v1203_v40 }
0x1762   :  { %1680 = shalt.err (!%p1677_p6)
}
0x1763   :  { %s1681_s5 = scalar_lea.hbm %s2053_s8, 1024 }
0x1764   :  { %p1682_p7 = scmp.ne.s32.totalorder %s2053_s8, %s1681_s5  ;;  %p1685_p8 = scmp.lt.u32.totalorder %s1681_s5, %s2053_s8 }
0x1766   :  { %p1687_p9 = pnand %p1685_p8, %p1682_p7 }
0x1768   :  { %1690 = shalt.err (!%p1687_p9)
}
0x1769   :  { %s1704_s17 = smov 128   ;;  %s1705_s2 = smov 8  }
0x176a   :  { %1230 = dma.vmem_to_hbm [thread:$0]  %s1225_s11, 1024, %s2053_s8, [#allocation5], %s1704_s17, %s1704_s17, %s1705_s2  }
0x176b   :  { %1691 = dma.done.wait [#allocation5], 1024  }
0x176c   :  { %1692 = vsyncadd [#allocation5], 4294966272 }
0x176d   :  { %1693 = dma.done.wait [#allocation7], 256  }
0x176e   :  { %1694 = vsyncadd [#allocation7], 4294967040 }
0x176f   :  { %1260 = vsyncpa [#allocation5], 1 }
0x1770   :  { %1261 = vsyncpa [#allocation7], 1 }

</bundles_post_ra>
